<compile_context>
chip_gen: v5e
topology: v5e:2x2
jax: 0.10.0
libtpu: 0.0.40
codegen_flags: <defaults>
</compile_context>

<pallas_src>
import math

import jax
import jax.numpy as jnp
import numpy as np
from jax.experimental import pallas as pl
from jax.experimental.pallas import tpu as pltpu


def _make_trainer_kernel(C, HW):
    """Kernel processing one (bt, C*HW) block: x_t, 1x1 mix + bias, MSE."""

    def kernel(w_ref, sa_ref, sb_ref, cond_ref, x0_ref, nz_ref, loss_ref):
        # Dense full-tile loads; compute in f32 regardless of storage dtype.
        x0 = x0_ref[...].astype(jnp.float32)       # (bt, C*HW)
        nz = nz_ref[...].astype(jnp.float32)       # (bt, C*HW)
        sa = sa_ref[...]                           # (bt, 1)  sqrt(alphas_bar)[t_b]
        sb = sb_ref[...]                           # (bt, 1)  sqrt(1-alphas_bar)[t_b]
        cond = cond_ref[...]                       # (bt, C)  per-(b, c) bias

        # Algorithm 1: x_t = sqrt(ab_t)*x_0 + sqrt(1-ab_t)*noise   (one full-tile FMA)
        x_t = sa * x0 + sb * nz                    # (bt, C*HW)

        # Synthetic model: 1x1 conv over channels + conditioning bias.
        # Lane-aligned slabs (HW multiple of 128 -> whole-vreg slices), scalar
        # weights from SMEM; each dest-channel result is stored immediately so
        # the output buffer drains early (no concat, nothing tile-sized live).
        for c in range(C):
            acc = w_ref[c * C + 0] * x_t[:, 0:HW]
            for k in range(1, C):
                acc = acc + w_ref[c * C + k] * x_t[:, k * HW:(k + 1) * HW]
            eps_c = acc + cond[:, c:c + 1]                      # (bt, HW)
            d = eps_c - nz[:, c * HW:(c + 1) * HW]              # mse, reduction='none'
            loss_ref[:, c * HW:(c + 1) * HW] = (d * d).astype(loss_ref.dtype)

    return kernel


def _pick_bt(B, bytes_per_batch, target_tile_bytes):
    """Batches per grid step: layout-legal (bt==B or 8|bt and bt|B), fits the
    byte target, and prefers >= 2 grid steps (both v7x TensorCores)."""
    desired = max(1, min(B, target_tile_bytes // max(bytes_per_batch, 1)))
    legal = [d for d in range(8, B, 8) if B % d == 0]   # proper splits
    if not legal:
        return B                                        # full-extent block (always legal)
    fits = [d for d in legal if d <= desired]
    if fits:
        return max(fits)
    return min(legal)


def gaussian_diffusion_trainer_loss(x_0, noise, sqrt_ab_t, sqrt_1mab_t, w, cond,
                                    *, target_tile_bytes=2 << 20):
    """x_0/noise: (B, C, H, W); sqrt_*: (B,); w: (C, C); cond: (B, C)."""
    B, C, H, W = x_0.shape
    HW = H * W
    CHW = C * HW

    # Free, contiguous views: row = batch, lanes = channel-major spatial.
    # Native dtype across HBM (upcast happens inside the kernel).
    x0_rows = x_0.reshape(B, CHW)
    nz_rows = noise.reshape(B, CHW)
    out_dtype = x_0.dtype

    # Per-row coefficient columns / per-(b, c) bias — tiny VMEM blocks.
    sa_col = sqrt_ab_t.reshape(B, 1).astype(jnp.float32)
    sb_col = sqrt_1mab_t.reshape(B, 1).astype(jnp.float32)
    cond_bc = cond.reshape(B, C).astype(jnp.float32)

    # 1x1-conv weights: C*C scalars in SMEM (no micro-DMAs, no MXU).
    w_flat = w.reshape(C * C).astype(jnp.float32)

    bytes_per_batch = CHW * x0_rows.dtype.itemsize
    bt = _pick_bt(B, bytes_per_batch, target_tile_bytes)
    grid = (B // bt,)

    # VMEM budget: (2 inputs + 1 output) x 2 pipeline buffers x tile, plus
    # in-kernel f32 temporaries (x_t / eps / diff) and headroom.  Capped well
    # under v7x's 64 MiB physical VMEM; also lifts v5e's 16 MiB default.
    tile_in = bt * CHW * x0_rows.dtype.itemsize
    tile_out = bt * CHW * jnp.dtype(out_dtype).itemsize
    temps = 3 * bt * CHW * 4
    vmem_needed = 2 * (2 * tile_in + tile_out) + temps + (2 << 20)
    vmem_limit = int(min(48 << 20, max(vmem_needed, 16 << 20)))

    smem_spec = pl.BlockSpec(memory_space=pltpu.MemorySpace.SMEM)
    row_spec = pl.BlockSpec((bt, CHW), lambda i: (i, 0))
    col_spec = pl.BlockSpec((bt, 1), lambda i: (i, 0))
    cond_spec = pl.BlockSpec((bt, C), lambda i: (i, 0))

    loss_rows = pl.pallas_call(
        _make_trainer_kernel(C, HW),
        out_shape=jax.ShapeDtypeStruct((B, CHW), out_dtype),
        grid_spec=pltpu.PrefetchScalarGridSpec(
            num_scalar_prefetch=0,
            grid=grid,
            in_specs=[
                smem_spec,    # 1x1-conv weight           (C*C,)  SMEM scalars
                col_spec,     # sqrt(alphas_bar)[t]       (B, 1)
                col_spec,     # sqrt(1 - alphas_bar)[t]   (B, 1)
                cond_spec,    # conditioning bias         (B, C)
                row_spec,     # x_0                       (B, C*HW)
                row_spec,     # noise                     (B, C*HW)
            ],
            out_specs=row_spec,
        ),
        compiler_params=pltpu.CompilerParams(
            dimension_semantics=("parallel",),
            vmem_limit_bytes=vmem_limit,
        ),
    )(w_flat, sa_col, sb_col, cond_bc, x0_rows, nz_rows)

    return loss_rows.reshape(B, C, H, W)


def make_diffusion_buffers(beta_1, beta_T, T):
    # linear schedule, double precision like register_buffer(...).double()
    betas = np.linspace(beta_1, beta_T, T, dtype=np.float64)
    alphas = 1.0 - betas
    alphas_bar = np.cumprod(alphas)
    sqrt_alphas_bar = jnp.asarray(np.sqrt(alphas_bar), dtype=jnp.float32)
    sqrt_one_minus_alphas_bar = jnp.asarray(np.sqrt(1.0 - alphas_bar), dtype=jnp.float32)
    return sqrt_alphas_bar, sqrt_one_minus_alphas_bar


if __name__ == "__main__":
    B, C, H, W = 2, 4, 16, 16
    T = 100
    num_classes = 10
    temb_dim = 32

    key = jax.random.PRNGKey(0)
    k_x, k_lab, k_t, k_noise, k_w, k_b, k_tp, k_le = jax.random.split(key, 8)

    # inputs to forward(x_0, labels)
    x_0 = jax.random.normal(k_x, (B, C, H, W), dtype=jnp.float32)
    labels = jax.random.randint(k_lab, (B,), 0, num_classes)

    # diffusion buffers (__init__)
    sqrt_alphas_bar, sqrt_one_minus_alphas_bar = make_diffusion_buffers(1e-4, 0.02, T)

    # deterministic synthetic model parameters (no checkpoint load)
    w = 0.1 * jax.random.normal(k_w, (C, C), dtype=jnp.float32)
    bias = 0.1 * jax.random.normal(k_b, (C,), dtype=jnp.float32)
    t_proj = 0.1 * jax.random.normal(k_tp, (temb_dim, C), dtype=jnp.float32)
    label_table = 0.1 * jax.random.normal(k_le, (num_classes, C), dtype=jnp.float32)

    # Algorithm 1 RNG (torch.randint / torch.randn_like equivalents)
    t = jax.random.randint(k_t, (B,), 0, T)
    noise = jax.random.normal(k_noise, x_0.shape, dtype=jnp.float32)

    # extract(...) glue: gather per-batch coefficients
    sab_t = sqrt_alphas_bar[t]
    s1mab_t = sqrt_one_minus_alphas_bar[t]

    # conditioning glue: sinusoidal time embedding projected to C + label emb
    half = temb_dim // 2
    freqs = jnp.exp(-math.log(10000.0) * jnp.arange(half, dtype=jnp.float32) / half)
    ang = t.astype(jnp.float32)[:, None] * freqs[None, :]
    temb = jnp.concatenate([jnp.sin(ang), jnp.cos(ang)], axis=-1)        # (B, temb_dim)
    cond = bias[None, :] + temb @ t_proj + label_table[labels]           # (B, C)

    # Pallas kernel: x_t construction + model + per-element MSE loss
    loss = gaussian_diffusion_trainer_loss(x_0, noise, sab_t, s1mab_t, w, cond)
    loss = jax.block_until_ready(loss)

    # pure-JAX reference check
    x_t_ref = sab_t[:, None, None, None] * x_0 + s1mab_t[:, None, None, None] * noise
    eps_ref = jnp.einsum("oc,bchw->bohw", w, x_t_ref) + cond[:, :, None, None]
    loss_ref = (eps_ref - noise) ** 2
    assert loss.shape == x_0.shape and loss.dtype == jnp.float32
    np.testing.assert_allclose(np.asarray(loss), np.asarray(loss_ref), rtol=1e-4, atol=1e-5)

    print("KERNEL_OK")
</pallas_src>

<mosaic_0001>
module attributes {stable_mosaic.version = 11 : i64} {
  func.func @kernel(%arg0: i32, %arg1: memref<16xf32, #tpu.memory_space<smem>>, %arg2: memref<2x1xf32, #tpu.memory_space<vmem>>, %arg3: memref<2x1xf32, #tpu.memory_space<vmem>>, %arg4: memref<2x4xf32, #tpu.memory_space<vmem>>, %arg5: memref<2x1024xf32, #tpu.memory_space<vmem>>, %arg6: memref<2x1024xf32, #tpu.memory_space<vmem>>, %arg7: memref<2x1024xf32, #tpu.memory_space<vmem>>) attributes {dimension_semantics = [#tpu.dimension_semantics<parallel>], iteration_bounds = array<i64: 1>, scalar_prefetch = 0 : i64, scratch_operands = 0 : i64, tpu.core_type = #tpu.core_type<tc>, window_params = [{transform_indices = @transform_0, window_bounds = array<i64: 16>}, {transform_indices = @transform_1, window_bounds = array<i64: 2, 1>}, {transform_indices = @transform_2, window_bounds = array<i64: 2, 1>}, {transform_indices = @transform_3, window_bounds = array<i64: 2, 4>}, {transform_indices = @transform_4, window_bounds = array<i64: 2, 1024>}, {transform_indices = @transform_5, window_bounds = array<i64: 2, 1024>}, {transform_indices = @transform_6, window_bounds = array<i64: 2, 1024>}]} {
    %c0 = arith.constant 0 : index
    %c0_0 = arith.constant 0 : index
    %0 = vector.load %arg5[%c0, %c0_0] : memref<2x1024xf32, #tpu.memory_space<vmem>>, vector<2x1024xf32>
    %c0_1 = arith.constant 0 : index
    %c0_2 = arith.constant 0 : index
    %1 = vector.load %arg6[%c0_1, %c0_2] : memref<2x1024xf32, #tpu.memory_space<vmem>>, vector<2x1024xf32>
    %c0_3 = arith.constant 0 : index
    %c0_4 = arith.constant 0 : index
    %2 = vector.load %arg2[%c0_3, %c0_4] : memref<2x1xf32, #tpu.memory_space<vmem>>, vector<2x1xf32>
    %c0_5 = arith.constant 0 : index
    %c0_6 = arith.constant 0 : index
    %3 = vector.load %arg3[%c0_5, %c0_6] : memref<2x1xf32, #tpu.memory_space<vmem>>, vector<2x1xf32>
    %c0_7 = arith.constant 0 : index
    %c0_8 = arith.constant 0 : index
    %4 = vector.load %arg4[%c0_7, %c0_8] : memref<2x4xf32, #tpu.memory_space<vmem>>, vector<2x4xf32>
    %5 = vector.broadcast %2 : vector<2x1xf32> to vector<2x1024xf32>
    %6 = arith.mulf %5, %0 : vector<2x1024xf32>
    %7 = vector.broadcast %3 : vector<2x1xf32> to vector<2x1024xf32>
    %8 = arith.mulf %7, %1 : vector<2x1024xf32>
    %9 = arith.addf %6, %8 : vector<2x1024xf32>
    %c0_9 = arith.constant 0 : index
    %10 = memref.load %arg1[%c0_9] : memref<16xf32, #tpu.memory_space<smem>>
    %11 = vector.extract_strided_slice %9 {offsets = [0, 0], sizes = [2, 256], strides = [1, 1]} : vector<2x1024xf32> to vector<2x256xf32>
    %12 = vector.broadcast %10 : f32 to vector<2x256xf32>
    %13 = arith.mulf %12, %11 : vector<2x256xf32>
    %c1 = arith.constant 1 : index
    %14 = memref.load %arg1[%c1] : memref<16xf32, #tpu.memory_space<smem>>
    %15 = vector.extract_strided_slice %9 {offsets = [0, 256], sizes = [2, 256], strides = [1, 1]} : vector<2x1024xf32> to vector<2x256xf32>
    %16 = vector.broadcast %14 : f32 to vector<2x256xf32>
    %17 = arith.mulf %16, %15 : vector<2x256xf32>
    %18 = arith.addf %13, %17 : vector<2x256xf32>
    %c2 = arith.constant 2 : index
    %19 = memref.load %arg1[%c2] : memref<16xf32, #tpu.memory_space<smem>>
    %20 = vector.extract_strided_slice %9 {offsets = [0, 512], sizes = [2, 256], strides = [1, 1]} : vector<2x1024xf32> to vector<2x256xf32>
    %21 = vector.broadcast %19 : f32 to vector<2x256xf32>
    %22 = arith.mulf %21, %20 : vector<2x256xf32>
    %23 = arith.addf %18, %22 : vector<2x256xf32>
    %c3 = arith.constant 3 : index
    %24 = memref.load %arg1[%c3] : memref<16xf32, #tpu.memory_space<smem>>
    %25 = vector.extract_strided_slice %9 {offsets = [0, 768], sizes = [2, 256], strides = [1, 1]} : vector<2x1024xf32> to vector<2x256xf32>
    %26 = vector.broadcast %24 : f32 to vector<2x256xf32>
    %27 = arith.mulf %26, %25 : vector<2x256xf32>
    %28 = arith.addf %23, %27 : vector<2x256xf32>
    %29 = vector.extract_strided_slice %4 {offsets = [0, 0], sizes = [2, 1], strides = [1, 1]} : vector<2x4xf32> to vector<2x1xf32>
    %30 = vector.broadcast %29 : vector<2x1xf32> to vector<2x256xf32>
    %31 = arith.addf %28, %30 : vector<2x256xf32>
    %32 = vector.extract_strided_slice %1 {offsets = [0, 0], sizes = [2, 256], strides = [1, 1]} : vector<2x1024xf32> to vector<2x256xf32>
    %33 = arith.subf %31, %32 : vector<2x256xf32>
    %34 = arith.mulf %33, %33 : vector<2x256xf32>
    %c0_10 = arith.constant 0 : index
    %c0_11 = arith.constant 0 : index
    %35 = vector.load %arg7[%c0_10, %c0_11] : memref<2x1024xf32, #tpu.memory_space<vmem>>, vector<2x256xf32>
    tpu.vector_store %arg7[%c0_10, %c0_11], %34 {strides = array<i32>} : memref<2x1024xf32, #tpu.memory_space<vmem>>, vector<2x256xf32>,
    %c4 = arith.constant 4 : index
    %36 = memref.load %arg1[%c4] : memref<16xf32, #tpu.memory_space<smem>>
    %37 = vector.extract_strided_slice %9 {offsets = [0, 0], sizes = [2, 256], strides = [1, 1]} : vector<2x1024xf32> to vector<2x256xf32>
    %38 = vector.broadcast %36 : f32 to vector<2x256xf32>
    %39 = arith.mulf %38, %37 : vector<2x256xf32>
    %c5 = arith.constant 5 : index
    %40 = memref.load %arg1[%c5] : memref<16xf32, #tpu.memory_space<smem>>
    %41 = vector.extract_strided_slice %9 {offsets = [0, 256], sizes = [2, 256], strides = [1, 1]} : vector<2x1024xf32> to vector<2x256xf32>
    %42 = vector.broadcast %40 : f32 to vector<2x256xf32>
    %43 = arith.mulf %42, %41 : vector<2x256xf32>
    %44 = arith.addf %39, %43 : vector<2x256xf32>
    %c6 = arith.constant 6 : index
    %45 = memref.load %arg1[%c6] : memref<16xf32, #tpu.memory_space<smem>>
    %46 = vector.extract_strided_slice %9 {offsets = [0, 512], sizes = [2, 256], strides = [1, 1]} : vector<2x1024xf32> to vector<2x256xf32>
    %47 = vector.broadcast %45 : f32 to vector<2x256xf32>
    %48 = arith.mulf %47, %46 : vector<2x256xf32>
    %49 = arith.addf %44, %48 : vector<2x256xf32>
    %c7 = arith.constant 7 : index
    %50 = memref.load %arg1[%c7] : memref<16xf32, #tpu.memory_space<smem>>
    %51 = vector.extract_strided_slice %9 {offsets = [0, 768], sizes = [2, 256], strides = [1, 1]} : vector<2x1024xf32> to vector<2x256xf32>
    %52 = vector.broadcast %50 : f32 to vector<2x256xf32>
    %53 = arith.mulf %52, %51 : vector<2x256xf32>
    %54 = arith.addf %49, %53 : vector<2x256xf32>
    %55 = vector.extract_strided_slice %4 {offsets = [0, 1], sizes = [2, 1], strides = [1, 1]} : vector<2x4xf32> to vector<2x1xf32>
    %56 = vector.broadcast %55 : vector<2x1xf32> to vector<2x256xf32>
    %57 = arith.addf %54, %56 : vector<2x256xf32>
    %58 = vector.extract_strided_slice %1 {offsets = [0, 256], sizes = [2, 256], strides = [1, 1]} : vector<2x1024xf32> to vector<2x256xf32>
    %59 = arith.subf %57, %58 : vector<2x256xf32>
    %60 = arith.mulf %59, %59 : vector<2x256xf32>
    %c0_12 = arith.constant 0 : index
    %c256 = arith.constant 256 : index
    %61 = vector.load %arg7[%c0_12, %c256] : memref<2x1024xf32, #tpu.memory_space<vmem>>, vector<2x256xf32>
    tpu.vector_store %arg7[%c0_12, %c256], %60 {strides = array<i32>} : memref<2x1024xf32, #tpu.memory_space<vmem>>, vector<2x256xf32>,
    %c8 = arith.constant 8 : index
    %62 = memref.load %arg1[%c8] : memref<16xf32, #tpu.memory_space<smem>>
    %63 = vector.extract_strided_slice %9 {offsets = [0, 0], sizes = [2, 256], strides = [1, 1]} : vector<2x1024xf32> to vector<2x256xf32>
    %64 = vector.broadcast %62 : f32 to vector<2x256xf32>
    %65 = arith.mulf %64, %63 : vector<2x256xf32>
    %c9 = arith.constant 9 : index
    %66 = memref.load %arg1[%c9] : memref<16xf32, #tpu.memory_space<smem>>
    %67 = vector.extract_strided_slice %9 {offsets = [0, 256], sizes = [2, 256], strides = [1, 1]} : vector<2x1024xf32> to vector<2x256xf32>
    %68 = vector.broadcast %66 : f32 to vector<2x256xf32>
    %69 = arith.mulf %68, %67 : vector<2x256xf32>
    %70 = arith.addf %65, %69 : vector<2x256xf32>
    %c10 = arith.constant 10 : index
    %71 = memref.load %arg1[%c10] : memref<16xf32, #tpu.memory_space<smem>>
    %72 = vector.extract_strided_slice %9 {offsets = [0, 512], sizes = [2, 256], strides = [1, 1]} : vector<2x1024xf32> to vector<2x256xf32>
    %73 = vector.broadcast %71 : f32 to vector<2x256xf32>
    %74 = arith.mulf %73, %72 : vector<2x256xf32>
    %75 = arith.addf %70, %74 : vector<2x256xf32>
    %c11 = arith.constant 11 : index
    %76 = memref.load %arg1[%c11] : memref<16xf32, #tpu.memory_space<smem>>
    %77 = vector.extract_strided_slice %9 {offsets = [0, 768], sizes = [2, 256], strides = [1, 1]} : vector<2x1024xf32> to vector<2x256xf32>
    %78 = vector.broadcast %76 : f32 to vector<2x256xf32>
    %79 = arith.mulf %78, %77 : vector<2x256xf32>
    %80 = arith.addf %75, %79 : vector<2x256xf32>
    %81 = vector.extract_strided_slice %4 {offsets = [0, 2], sizes = [2, 1], strides = [1, 1]} : vector<2x4xf32> to vector<2x1xf32>
    %82 = vector.broadcast %81 : vector<2x1xf32> to vector<2x256xf32>
    %83 = arith.addf %80, %82 : vector<2x256xf32>
    %84 = vector.extract_strided_slice %1 {offsets = [0, 512], sizes = [2, 256], strides = [1, 1]} : vector<2x1024xf32> to vector<2x256xf32>
    %85 = arith.subf %83, %84 : vector<2x256xf32>
    %86 = arith.mulf %85, %85 : vector<2x256xf32>
    %c0_13 = arith.constant 0 : index
    %c512 = arith.constant 512 : index
    %87 = vector.load %arg7[%c0_13, %c512] : memref<2x1024xf32, #tpu.memory_space<vmem>>, vector<2x256xf32>
    tpu.vector_store %arg7[%c0_13, %c512], %86 {strides = array<i32>} : memref<2x1024xf32, #tpu.memory_space<vmem>>, vector<2x256xf32>,
    %c12 = arith.constant 12 : index
    %88 = memref.load %arg1[%c12] : memref<16xf32, #tpu.memory_space<smem>>
    %89 = vector.extract_strided_slice %9 {offsets = [0, 0], sizes = [2, 256], strides = [1, 1]} : vector<2x1024xf32> to vector<2x256xf32>
    %90 = vector.broadcast %88 : f32 to vector<2x256xf32>
    %91 = arith.mulf %90, %89 : vector<2x256xf32>
    %c13 = arith.constant 13 : index
    %92 = memref.load %arg1[%c13] : memref<16xf32, #tpu.memory_space<smem>>
    %93 = vector.extract_strided_slice %9 {offsets = [0, 256], sizes = [2, 256], strides = [1, 1]} : vector<2x1024xf32> to vector<2x256xf32>
    %94 = vector.broadcast %92 : f32 to vector<2x256xf32>
    %95 = arith.mulf %94, %93 : vector<2x256xf32>
    %96 = arith.addf %91, %95 : vector<2x256xf32>
    %c14 = arith.constant 14 : index
    %97 = memref.load %arg1[%c14] : memref<16xf32, #tpu.memory_space<smem>>
    %98 = vector.extract_strided_slice %9 {offsets = [0, 512], sizes = [2, 256], strides = [1, 1]} : vector<2x1024xf32> to vector<2x256xf32>
    %99 = vector.broadcast %97 : f32 to vector<2x256xf32>
    %100 = arith.mulf %99, %98 : vector<2x256xf32>
    %101 = arith.addf %96, %100 : vector<2x256xf32>
    %c15 = arith.constant 15 : index
    %102 = memref.load %arg1[%c15] : memref<16xf32, #tpu.memory_space<smem>>
    %103 = vector.extract_strided_slice %9 {offsets = [0, 768], sizes = [2, 256], strides = [1, 1]} : vector<2x1024xf32> to vector<2x256xf32>
    %104 = vector.broadcast %102 : f32 to vector<2x256xf32>
    %105 = arith.mulf %104, %103 : vector<2x256xf32>
    %106 = arith.addf %101, %105 : vector<2x256xf32>
    %107 = vector.extract_strided_slice %4 {offsets = [0, 3], sizes = [2, 1], strides = [1, 1]} : vector<2x4xf32> to vector<2x1xf32>
    %108 = vector.broadcast %107 : vector<2x1xf32> to vector<2x256xf32>
    %109 = arith.addf %106, %108 : vector<2x256xf32>
    %110 = vector.extract_strided_slice %1 {offsets = [0, 768], sizes = [2, 256], strides = [1, 1]} : vector<2x1024xf32> to vector<2x256xf32>
    %111 = arith.subf %109, %110 : vector<2x256xf32>
    %112 = arith.mulf %111, %111 : vector<2x256xf32>
    %c0_14 = arith.constant 0 : index
    %c768 = arith.constant 768 : index
    %113 = vector.load %arg7[%c0_14, %c768] : memref<2x1024xf32, #tpu.memory_space<vmem>>, vector<2x256xf32>
    tpu.vector_store %arg7[%c0_14, %c768], %112 {strides = array<i32>} : memref<2x1024xf32, #tpu.memory_space<vmem>>, vector<2x256xf32>,
    return
  }
  func.func @transform_0(%arg0: i32) -> i32 {
    %c0_i32 = arith.constant 0 : i32
    %c0_i32_0 = arith.constant 0 : i32
    return %c0_i32 : i32
  }
  func.func @transform_1(%arg0: i32) -> (i32, i32) {
    %c0_i32 = arith.constant 0 : i32
    %c0_i32_0 = arith.constant 0 : i32
    return %arg0, %c0_i32 : i32, i32
  }
  func.func @transform_2(%arg0: i32) -> (i32, i32) {
    %c0_i32 = arith.constant 0 : i32
    %c0_i32_0 = arith.constant 0 : i32
    return %arg0, %c0_i32 : i32, i32
  }
  func.func @transform_3(%arg0: i32) -> (i32, i32) {
    %c0_i32 = arith.constant 0 : i32
    %c0_i32_0 = arith.constant 0 : i32
    return %arg0, %c0_i32 : i32, i32
  }
  func.func @transform_4(%arg0: i32) -> (i32, i32) {
    %c0_i32 = arith.constant 0 : i32
    %c0_i32_0 = arith.constant 0 : i32
    return %arg0, %c0_i32 : i32, i32
  }
  func.func @transform_5(%arg0: i32) -> (i32, i32) {
    %c0_i32 = arith.constant 0 : i32
    %c0_i32_0 = arith.constant 0 : i32
    return %arg0, %c0_i32 : i32, i32
  }
  func.func @transform_6(%arg0: i32) -> (i32, i32) {
    %c0_i32 = arith.constant 0 : i32
    %c0_i32_0 = arith.constant 0 : i32
    return %arg0, %c0_i32 : i32, i32
  }
}

</mosaic_0001>

<bundles_post_ra>
// kernel: tpu_custom_call.1
= control target key start
LH: loop header
LB: loop body
LE: loop exit
PB: predicated region body
PF: predicated region fallthrough
CT: control target
= control target key end

     0   :  { %11 = vsyncpa [#allocation5], 0  ;;  %s672_s0 = inlined_call_operand.vmem [shape: f32[16], index: 0, kind: input, shape index: {}]   ;;  %s673_s1 = inlined_call_operand.vmem [shape: f32[2,1], index: 1, kind: input, shape index: {}]   ;;  %s674_s2 = inlined_call_operand.vmem [shape: f32[2,1], index: 2, kind: input, shape index: {}]   ;;  %s675_s3 = inlined_call_operand.vmem [shape: f32[2,4], index: 3, kind: input, shape index: {}]   ;;  %s676_s4 = inlined_call_operand.hbm [shape: f32[2,1024], index: 4, kind: input, shape index: {}]   ;;  %s677_s5 = inlined_call_operand.hbm [shape: f32[2,1024], index: 5, kind: input, shape index: {}]   ;;  %s678_s6 = inlined_call_operand.hbm [shape: f32[2,1024], index: 6, kind: output, shape index: {}]  }
   0x1   :  { %12 = vsyncpa [#allocation3], 0 }
   0x2   :  { %13 = vsyncpa [#allocation8], 0 }
   0x3   :  { %14 = vsyncpa [#allocation4], 0  ;;  %s20_s23 = sshll.u32 %s672_s0, 4  ;;  %s35_s26 = sshll.u32 %s676_s4, 4  ;;  %s21_s23 = int_to_ptr.vmem [resolvable:$true] %s20_s23  ;;  %s36_s26 = int_to_ptr.hbm [resolvable:$true] %s35_s26 }
   0x4   :  { %s462_s27 = smov [#allocation2]   ;;  %s463_s28 = smov [#allocation6]  }
   0x5   :  { %23 = dma.vmem_to_smem %s21_s23, 16, %s462_s27, [#allocation5]  }
   0x6   :  { %s37_s29 = sshll.u32 %s463_s28, 4  ;;  %s46_s8 = sshll.u32 %s677_s5, 4  ;;  %s38_s29 = int_to_ptr.vmem [resolvable:$true] %s37_s29  ;;  %s47_s8 = int_to_ptr.hbm [resolvable:$true] %s46_s8 }
   0x7   :  { %40 = dma.hbm_to_vmem [thread:$0]  %s36_s26, 256, %s38_s29, [#allocation3]  }
   0x8   :  { %s464_s9 = smov [#allocation7]  }
   0x9   :  { %s48_s10 = sshll.u32 %s464_s9, 4  ;;  %s49_s10 = int_to_ptr.vmem [resolvable:$true] %s48_s10 }
   0xa   :  { %51 = dma.hbm_to_vmem [thread:$0]  %s47_s8, 256, %s49_s10, [#allocation8]  }
   0xb   :  { %454 = dma.done.wait [#allocation5], 16  }
   0xc   :  { %455 = vsyncadd [#allocation5], 4294967280 }
   0xd   :  { %456 = dma.done.wait [#allocation3], 256  }
   0xe   :  { %457 = vsyncadd [#allocation3], 4294967040 }
   0xf   :  { %458 = dma.done.wait [#allocation8], 256  }
  0x10   :  { %459 = vsyncadd [#allocation8], 4294967040 }
  0x11   :  { %64 = sfence }
  0x12   :  { %v69_v0 = vld [vmem:[%s673_s1] sm:$0x3]  ;;  %v465_v1 = vmov 0   ;;  %v466_v3 = vmov 2   ;;  %v467_v5 = vmov 1   ;;  %v468_v6 = vmov 3  }
  0x13   :  { %364 = vset.pattern.permute.xlu0 %v465_v1  ;;  %365 = vset.pattern.permute.xlu1 %v465_v1  ;;  %v71_v2 = vld [vmem:[%s675_s3] sm:$0x3]  ;;  %v65_v7 = vld [vmem:[#allocation6] sm:$0xff]  ;;  %v67_v8 = vld [vmem:[#allocation7] sm:$0xff]  ;;  %s539_s1 = sld [smem:[#allocation2 + $0x8]]  ;;  %vm189_vm0 = vcmask 1041408  }
  0x14   :  { %74 = vperm.xlu0 %364, %v69_v0   ;;  %172 = vperm.xlu1 %365, %v71_v2   ;;  %v70_v4 = vld [vmem:[%s674_s2] sm:$0x3]  ;;  %79 = vst [vmem:[#allocation1] ss:$4 sm:$0xff] %v65_v7  ;;  %v66_v13 = vld [vmem:[#allocation6 + $0x8] sm:$0xff]  ;;  %s541_s2 = sld [smem:[#allocation2 + $0x9]] }
  0x15   :  { %367 = vset.pattern.permute.xlu2 %v466_v3  ;;  %81 = vst [vmem:[#allocation1 + $0x20] ss:$4 sm:$0xff] %v66_v13  ;;  %v68_v18 = vld [vmem:[#allocation7 + $0x8] sm:$0xff]  ;;  %s543_s3 = sld [smem:[#allocation2 + $0xa]]  ;;  %s469_s27 = smov [#allocation9]  }
  0x16   :  { %259 = vperm.xlu2 %367, %v71_v2   ;;  %s545_s14 = sld [smem:[#allocation2 + $0xb]]  ;;  %s327_s28 = sshll.u32 %s469_s27, 4  ;;  %s328_s28 = int_to_ptr.vmem [resolvable:$true] %s327_s28 }
  0x17   :  { %s547_s15 = sld [smem:[#allocation2]]  ;;  %s329_s7 = sshll.u32 %s678_s6, 4  ;;  %s330_s7 = int_to_ptr.hbm [resolvable:$true] %s329_s7 }
  0x18   :  { %s549_s16 = sld [smem:[#allocation2 + $0x1]] }
  0x19   :  { %s555_s17 = sld [smem:[#allocation2 + $0x2]]  ;;  %v237_v30 = vstv %s539_s1 }
  0x1a   :  { %s557_s18 = sld [smem:[#allocation2 + $0x3]]  ;;  %v241_v31 = vstv %s541_s2 }
  0x1b   :  { %v82_v9 = vld.sshfl [vmem:[#allocation1] sm:$0xff pattern:$0x73625140]  ;;  %v83_v10 = vld.sshfl [vmem:[#allocation1 + $0x8] sm:$0xff pattern:$0x73625140]  ;;  %v247_v32 = vstv %s543_s3 }
  0x1c   :  { %108 = vperm.xlu0 %364, %v70_v4   ;;  %366 = vset.pattern.permute.xlu1 %v467_v5  ;;  %v84_v11 = vld.sshfl [vmem:[#allocation1 + $0x10] sm:$0xff pattern:$0x73625140]  ;;  %v85_v12 = vld.sshfl [vmem:[#allocation1 + $0x18] sm:$0xff pattern:$0x73625140]  ;;  %v253_v33 = vstv %s545_s14 }
  0x1d   :  { %216 = vperm.xlu1 %366, %v71_v2   ;;  %113 = vst [vmem:[#allocation1] ss:$4 sm:$0xff] %v67_v8  ;;  %v86_v19 = vld.sshfl [vmem:[#allocation1 + $0x20] sm:$0xff pattern:$0x73625140]  ;;  %s559_s19 = sld [smem:[#allocation2 + $0xc]]  ;;  %v149_v34 = vstv %s547_s15 }
  0x1e   :  { %368 = vset.pattern.permute.xlu2 %v468_v6  ;;  %v87_v20 = vld.sshfl [vmem:[#allocation1 + $0x28] sm:$0xff pattern:$0x73625140]  ;;  %v88_v21 = vld.sshfl [vmem:[#allocation1 + $0x30] sm:$0xff pattern:$0x73625140]  ;;  %v153_v35 = vstv %s549_s16 }
  0x1f   :  { %302 = vperm.xlu2 %368, %v71_v2   ;;  %v89_v22 = vld.sshfl [vmem:[#allocation1 + $0x38] sm:$0xff pattern:$0x73625140]  ;;  %s561_s20 = sld [smem:[#allocation2 + $0xd]]  ;;  %v159_v36 = vstv %s555_s17 }
  0x20   :  { %115 = vst [vmem:[#allocation1 + $0x20] ss:$4 sm:$0xff] %v68_v18  ;;  %s563_s21 = sld [smem:[#allocation2 + $0xe]]  ;;  %v165_v37 = vstv %s557_s18 }
  0x21   :  { %s565_s22 = sld [smem:[#allocation2 + $0xf]] }
  0x22   :  { %s567_s23 = sld [smem:[#allocation2 + $0x4]] }
  0x23   :  { %s569_s24 = sld [smem:[#allocation2 + $0x5]]  ;;  %v280_v38 = vstv %s559_s19 }
  0x24   :  { %369 = vset.pattern.permute.xlu0 %v468_v6  ;;  %v523_v14 = vld.sshfl [vmem:[#allocation1] sm:$0xff pattern:$0x73625140]  ;;  %v525_v15 = vld.sshfl [vmem:[#allocation1 + $0x8] sm:$0xff pattern:$0x73625140] }
  0x25   :  { %v527_v16 = vld.sshfl [vmem:[#allocation1 + $0x10] sm:$0xff pattern:$0x73625140]  ;;  %v529_v17 = vld.sshfl [vmem:[#allocation1 + $0x18] sm:$0xff pattern:$0x73625140]  ;;  %v284_v39 = vstv %s561_s20 }
  0x26   :  { %177 = vst [vmem:[#allocation1] ss:$4 sm:$0xff] %v67_v8  ;;  %s571_s25 = sld [smem:[#allocation2 + $0x6]]  ;;  %v290_v40 = vstv %s563_s21 }
  0x27   :  { %s573_s26 = sld [smem:[#allocation2 + $0x7]]  ;;  %v296_v41 = vstv %s565_s22  ;;  %v120_v42 = vld.sshfl [vmem:[#allocation1 + $0x20] sm:$0xff pattern:$0x73625140] }
  0x28   :  { %v121_v43 = vld.sshfl [vmem:[#allocation1 + $0x28] sm:$0xff pattern:$0x73625140]  ;;  %v194_v44 = vstv %s567_s23  ;;  %v122_v52 = vld.sshfl [vmem:[#allocation1 + $0x30] sm:$0xff pattern:$0x73625140] }
  0x29   :  { %v198_v45 = vstv %s569_s24  ;;  %v123_v53 = vld.sshfl [vmem:[#allocation1 + $0x38] sm:$0xff pattern:$0x73625140] }
  0x2c   :  { %v204_v46 = vstv %s571_s25 }
  0x2d   :  { %v531_v23 = vld.sshfl [vmem:[#allocation1] sm:$0xff pattern:$0x73625140]  ;;  %v533_v24 = vld.sshfl [vmem:[#allocation1 + $0x8] sm:$0xff pattern:$0x73625140]  ;;  %v210_v47 = vstv %s573_s26 }
  0x2e   :  { %221 = vst [vmem:[#allocation1] ss:$4 sm:$0xff] %v67_v8 }
  0x35   :  { %v535_v25 = vld.sshfl [vmem:[#allocation1 + $0x10] sm:$0xff pattern:$0x73625140]  ;;  %v537_v26 = vld.sshfl [vmem:[#allocation1 + $0x18] sm:$0xff pattern:$0x73625140] }
  0x36   :  { %264 = vst [vmem:[#allocation1] ss:$4 sm:$0xff] %v68_v18 }
  0x3d   :  { %v551_v27 = vld.sshfl [vmem:[#allocation1] sm:$0xff pattern:$0x73625140]  ;;  %v553_v28 = vld.sshfl [vmem:[#allocation1 + $0x8] sm:$0xff pattern:$0x73625140] }
  0x3e   :  { %307 = vst [vmem:[#allocation1] ss:$4 sm:$0xff] %v68_v18 }
  0x86   :  { %v75_v29 = vpop.permute.xlu0 %74 }
  0x87   :  { %v98_v48 = vmul.f32 %v82_v9, %v75_v29  ;;  %v99_v49 = vmul.f32 %v83_v10, %v75_v29  ;;  %v100_v50 = vmul.f32 %v84_v11, %v75_v29  ;;  %v101_v51 = vmul.f32 %v85_v12, %v75_v29 }
  0x88   :  { %v102_v55 = vmul.f32 %v86_v19, %v75_v29  ;;  %v103_v56 = vmul.f32 %v87_v20, %v75_v29  ;;  %v104_v57 = vmul.f32 %v88_v21, %v75_v29  ;;  %v105_v58 = vmul.f32 %v89_v22, %v75_v29 }
  0x8e   :  { %v109_v54 = vpop.permute.xlu0 %108 }
  0x8f   :  { %v132_v59 = vmul.f32 %v523_v14, %v109_v54  ;;  %v133_v60 = vmul.f32 %v525_v15, %v109_v54  ;;  %v134_v61 = vmul.f32 %v527_v16, %v109_v54  ;;  %v135_v62 = vmul.f32 %v529_v17, %v109_v54  ;;  %v260_v15 = vpop.permute.xlu2 %259 }
  0x90   :  { %v136_v63 = vmul.f32 %v120_v42, %v109_v54  ;;  %v137_v0 = vmul.f32 %v121_v43, %v109_v54  ;;  %v138_v1 = vmul.f32 %v122_v52, %v109_v54  ;;  %v139_v2 = vmul.f32 %v123_v53, %v109_v54 }
  0x91   :  { %v140_v3 = vadd.f32 %v132_v59, %v98_v48  ;;  %v141_v4 = vadd.f32 %v133_v60, %v99_v49  ;;  %v595_v5 = vadd.f32 %v134_v61, %v100_v50  ;;  %v597_v6 = vadd.f32 %v135_v62, %v101_v51  ;;  %v173_v59 = vpop.permute.xlu1 %172 }
  0x92   :  { %v599_v7 = vadd.f32 %v136_v63, %v102_v55  ;;  %v601_v8 = vadd.f32 %v137_v0, %v103_v56  ;;  %v603_v9 = vadd.f32 %v138_v1, %v104_v57  ;;  %v605_v10 = vadd.f32 %v139_v2, %v105_v58 }
  0x93   :  { %v238_v11 = vmul.f32 %v237_v30, %v140_v3  ;;  %v239_v12 = vmul.f32 %v237_v30, %v141_v4  ;;  %v242_v13 = vmul.f32 %v241_v31, %v595_v5  ;;  %v243_v14 = vmul.f32 %v241_v31, %v597_v6 }
  0x94   :  { %v248_v16 = vmul.f32 %v247_v32, %v599_v7  ;;  %v249_v17 = vmul.f32 %v247_v32, %v601_v8  ;;  %v254_v18 = vmul.f32 %v253_v33, %v603_v9  ;;  %v255_v19 = vmul.f32 %v253_v33, %v605_v10 }
  0x95   :  { %v244_v20 = vadd.f32 %v242_v13, %v238_v11  ;;  %v245_v21 = vadd.f32 %v243_v14, %v239_v12  ;;  %v150_v22 = vmul.f32 %v149_v34, %v140_v3  ;;  %v151_v29 = vmul.f32 %v149_v34, %v141_v4 }
  0x96   :  { %v154_v30 = vmul.f32 %v153_v35, %v595_v5  ;;  %v155_v42 = vmul.f32 %v153_v35, %v597_v6  ;;  %v160_v31 = vmul.f32 %v159_v36, %v599_v7  ;;  %v161_v43 = vmul.f32 %v159_v36, %v601_v8 }
  0x97   :  { %v250_v32 = vadd.f32 %v248_v16, %v244_v20  ;;  %v251_v48 = vadd.f32 %v249_v17, %v245_v21  ;;  %v166_v33 = vmul.f32 %v165_v37, %v603_v9  ;;  %v167_v49 = vmul.f32 %v165_v37, %v605_v10  ;;  %v303_v14 = vpop.permute.xlu2 %302  ;;  %v309_v20 = vld.sshfl [vmem:[#allocation1 + $0x18] sm:$0xff pattern:$0x73625140] }
  0x98   :  { %v156_v50 = vadd.f32 %v154_v30, %v150_v22  ;;  %v157_v51 = vadd.f32 %v155_v42, %v151_v29  ;;  %v281_v34 = vmul.f32 %v280_v38, %v140_v3  ;;  %v282_v52 = vmul.f32 %v280_v38, %v141_v4 }
  0x99   :  { %v256_v53 = vadd.f32 %v254_v18, %v250_v32  ;;  %v257_v35 = vadd.f32 %v255_v19, %v251_v48  ;;  %v285_v54 = vmul.f32 %v284_v39, %v595_v5  ;;  %v286_v36 = vmul.f32 %v284_v39, %v597_v6  ;;  %v308_v19 = vld.sshfl [vmem:[#allocation1 + $0x10] sm:$0xff pattern:$0x73625140] }
  0x9a   :  { %v162_v55 = vadd.f32 %v160_v31, %v156_v50  ;;  %v163_v56 = vadd.f32 %v161_v43, %v157_v51  ;;  %v291_v57 = vmul.f32 %v290_v40, %v599_v7  ;;  %v292_v37 = vmul.f32 %v290_v40, %v601_v8  ;;  %v217_v50 = vpop.permute.xlu1 %216 }
  0x9b   :  { %v262_v58 = vadd.f32 %v260_v15, %v256_v53  ;;  %v263_v38 = vadd.f32 %v260_v15, %v257_v35  ;;  %v287_v60 = vadd.f32 %v285_v54, %v281_v34  ;;  %v288_v61 = vadd.f32 %v286_v36, %v282_v52 }
  0x9c   :  { %v168_v62 = vadd.f32 %v166_v33, %v162_v55  ;;  %v169_v63 = vadd.f32 %v167_v49, %v163_v56  ;;  %v297_v39 = vmul.f32 %v296_v41, %v603_v9  ;;  %v298_v0 = vmul.f32 %v296_v41, %v605_v10 }
  0x9d   :  { %v269_v1 = vsub.f32 %v262_v58, %v551_v27  ;;  %v270_v2 = vsub.f32 %v263_v38, %v553_v28  ;;  %v293_v40 = vadd.f32 %v291_v57, %v287_v60  ;;  %v294_v11 = vadd.f32 %v292_v37, %v288_v61 }
  0x9e   :  { %v175_v12 = vadd.f32 %v173_v59, %v168_v62  ;;  %v176_v13 = vadd.f32 %v173_v59, %v169_v63  ;;  %v195_v15 = vmul.f32 %v194_v44, %v140_v3  ;;  %v196_v16 = vmul.f32 %v194_v44, %v141_v4 }
  0x9f   :  { %v272_v17 = vmul.f32 %v270_v2, %v270_v2  ;;  %v299_v18 = vadd.f32 %v297_v39, %v293_v40  ;;  %v300_v41 = vadd.f32 %v298_v0, %v294_v11  ;;  %v199_v21 = vmul.f32 %v198_v45, %v595_v5 }
  0xa0   :  { %v182_v27 = vsub.f32 %v175_v12, %v531_v23  ;;  %v183_v28 = vsub.f32 %v176_v13, %v533_v24  ;;  %v200_v3 = vmul.f32 %v198_v45, %v597_v6  ;;  %v271_v44 = vmul.f32 %v269_v1, %v269_v1 }
  0xa1   :  { %v275_v4 = vrot.slane %v272_v17, 6  ;;  %v305_v22 = vadd.f32 %v303_v14, %v299_v18  ;;  %v306_v29 = vadd.f32 %v303_v14, %v300_v41  ;;  %v201_v42 = vadd.f32 %v199_v21, %v195_v15 }
  0xa2   :  { %v185_v30 = vmul.f32 %v183_v28, %v183_v28  ;;  %v202_v23 = vadd.f32 %v200_v3, %v196_v16  ;;  %v205_v24 = vmul.f32 %v204_v46, %v599_v7  ;;  %v184_v31 = vmul.f32 %v182_v27, %v182_v27 }
  0xa3   :  { %v312_v43 = vsub.f32 %v305_v22, %v308_v19  ;;  %v313_v32 = vsub.f32 %v306_v29, %v309_v20  ;;  %v206_v5 = vmul.f32 %v204_v46, %v601_v8  ;;  %v211_v45 = vmul.f32 %v210_v47, %v603_v9 }
  0xa4   :  { %v188_v48 = vrot.slane %v185_v30, 6  ;;  %v207_v33 = vadd.f32 %v205_v24, %v201_v42  ;;  %v276_v6 = vsel %vm189_vm0, %v271_v44, %v275_v4  ;;  %v212_v34 = vmul.f32 %v210_v47, %v605_v10 }
  0xa5   :  { %v315_v49 = vmul.f32 %v313_v32, %v313_v32  ;;  %v208_v51 = vadd.f32 %v206_v5, %v202_v23  ;;  %278 = vst [vmem:[#allocation9 + $0x8] sm:$0xf] %v276_v6  ;;  %v314_v53 = vmul.f32 %v312_v43, %v312_v43 }
  0xa6   :  { %v213_v7 = vadd.f32 %v211_v45, %v207_v33  ;;  %v190_v52 = vsel %vm189_vm0, %v184_v31, %v188_v48 }
  0xa7   :  { %v318_v35 = vrot.slane %v315_v49, 6  ;;  %v214_v46 = vadd.f32 %v212_v34, %v208_v51  ;;  %192 = vst [vmem:[#allocation9] sm:$0xf] %v190_v52 }
  0xa8   :  { %v219_v8 = vadd.f32 %v217_v50, %v213_v7 }
  0xa9   :  { %v319_v54 = vsel %vm189_vm0, %v314_v53, %v318_v35  ;;  %v220_v9 = vadd.f32 %v217_v50, %v214_v46 }
  0xaa   :  { %321 = vst [vmem:[#allocation9 + $0xc] sm:$0xf] %v319_v54  ;;  %v226_v36 = vsub.f32 %v219_v8, %v535_v25 }
  0xab   :  { %v227_v55 = vsub.f32 %v220_v9, %v537_v26 }
  0xac   :  { %v228_v47 = vmul.f32 %v226_v36, %v226_v36 }
  0xad   :  { %v229_v56 = vmul.f32 %v227_v55, %v227_v55 }
  0xaf   :  { %v232_v10 = vrot.slane %v229_v56, 6 }
  0xb1   :  { %v233_v57 = vsel %vm189_vm0, %v228_v47, %v232_v10 }
  0xb2   :  { %235 = vst [vmem:[#allocation9 + $0x4] sm:$0xf] %v233_v57 }
  0xb3   :  { %332 = dma.vmem_to_hbm [thread:$0]  %s328_s28, 256, %s330_s7, [#allocation4]  }
  0xb4   :  { %460 = dma.done.wait [#allocation4], 256  }
  0xb5   :  { %461 = vsyncadd [#allocation4], 4294967040 }
  0xb6   :  { %337 = vsyncpa [#allocation3], 1 }
  0xb7   :  { %338 = vsyncpa [#allocation8], 1 }
  0xb8   :  { %339 = vsyncpa [#allocation4], 1 }
  0xb9   :  { %340 = vsyncpa [#allocation5], 1 }

</bundles_post_ra>
